<compile_context>
chip_gen: v7x
topology: tpu7x:2x2x1
jax: 0.10.0
libtpu: 0.0.40
codegen_flags: <defaults>
</compile_context>

<pallas_src>
import jax
import jax.numpy as jnp
from jax.experimental import pallas as pl
from jax.experimental.pallas import tpu as pltpu


# ---------------------------------------------------------------------------
# Zero-cost option: plain pass-through.  Preferred when the identity lives
# inside a larger jitted graph — XLA removes it for free.
# ---------------------------------------------------------------------------
def identity(x: jax.Array) -> jax.Array:
    """True zero-cost identity: no pallas_call, XLA elides it entirely."""
    return x


# ---------------------------------------------------------------------------
# Primary kernelized path: output aliases the input buffer (zero data
# movement).  Truly free when the caller donates x
# (jax.jit(identity_forward, donate_argnums=0)); without donation XLA inserts
# a single protective copy of x.  Caller contract: after donation, x must not
# be reused.
# ---------------------------------------------------------------------------
def _identity_alias_kernel(x_hbm_ref, o_hbm_ref):
    # Output buffer IS the input buffer (input_output_aliases={0: 0}); the
    # identity needs no data movement, so the body is intentionally empty.
    # (Verified to compile/run clean on current Mosaic; if a future version
    # warns about a never-written output ref, a single pltpu.touch(o_hbm_ref)
    # restores the ordering without moving data.)
    del x_hbm_ref, o_hbm_ref


def identity_forward(x: jax.Array) -> jax.Array:
    """Identity forward pass; output aliases the input buffer (zero-copy under donation)."""
    return pl.pallas_call(
        _identity_alias_kernel,
        out_shape=jax.ShapeDtypeStruct(x.shape, x.dtype),
        in_specs=[pl.BlockSpec(memory_space=pl.ANY)],   # leave input in HBM
        out_specs=pl.BlockSpec(memory_space=pl.ANY),    # output = same HBM buffer
        input_output_aliases={0: 0},
    )(x)


# ---------------------------------------------------------------------------
# Fallback path: the caller provably needs a fresh buffer.
# Zero VMEM footprint (safe on v7x's 64 MiB VMEM), no grid, no vector-unit
# work: K contiguous leading-dim HBM->HBM DMAs kept in flight simultaneously.
# ---------------------------------------------------------------------------
def _make_identity_copy_kernel(chunks):
    """Builds a kernel issuing one DMA per (start, size) leading-dim chunk."""

    def kernel(x_hbm_ref, o_hbm_ref, copy_sems):
        copies = []
        # Start all K DMAs first (multiple outstanding transfers), then wait.
        for c, (start, size) in enumerate(chunks):
            cp = pltpu.make_async_copy(
                x_hbm_ref.at[pl.ds(start, size)],
                o_hbm_ref.at[pl.ds(start, size)],
                copy_sems.at[c],
            )
            cp.start()
            copies.append(cp)
        for cp in copies:
            cp.wait()

    return kernel


def _make_identity_copy_kernel_whole():
    """Whole-array single-DMA kernel (0-D / un-chunkable inputs)."""

    def kernel(x_hbm_ref, o_hbm_ref, copy_sems):
        cp = pltpu.make_async_copy(x_hbm_ref, o_hbm_ref, copy_sems.at[0])
        cp.start()
        cp.wait()

    return kernel


def identity_forward_copy(
    x: jax.Array,
    *,
    max_outstanding_dmas: int = 8,   # v7x benefits from 8+; v5e/v6e saturate at 2-4
    min_chunk_bytes: int = 1 << 20,  # keep chunks >= ~1 MiB so issue cost is negligible
) -> jax.Array:
    """Identity forward pass producing a fresh buffer via chunked HBM->HBM DMAs."""
    nbytes = x.size * x.dtype.itemsize

    if x.ndim == 0 or x.shape[0] <= 1:
        num_chunks = 1
    else:
        num_chunks = max(
            1,
            min(max_outstanding_dmas, x.shape[0], nbytes // max(1, min_chunk_bytes)),
        )

    if x.ndim == 0:
        kernel = _make_identity_copy_kernel_whole()
    else:
        # Contiguous, leading-dim-only chunk boundaries (static at trace time).
        leading = x.shape[0]
        base, rem = divmod(leading, num_chunks)
        chunks, start = [], 0
        for i in range(num_chunks):
            size = base + (1 if i < rem else 0)
            chunks.append((start, size))
            start += size
        kernel = _make_identity_copy_kernel(tuple(chunks))

    return pl.pallas_call(
        kernel,
        out_shape=jax.ShapeDtypeStruct(x.shape, x.dtype),
        in_specs=[pl.BlockSpec(memory_space=pl.ANY)],   # no VMEM staging
        out_specs=pl.BlockSpec(memory_space=pl.ANY),    # write straight to HBM
        scratch_shapes=[pltpu.SemaphoreType.DMA((num_chunks,))],
        cost_estimate=pl.CostEstimate(
            flops=0, transcendentals=0, bytes_accessed=2 * nbytes
        ),
    )(x)


if __name__ == "__main__":
    key = jax.random.PRNGKey(0)
    # Small NCHW input consistent with a conv-feature-extraction pipeline.
    x = jax.random.normal(key, (2, 4, 16, 16), dtype=jnp.float32)

    # Primary path: aliased zero-copy identity (x not donated here, so XLA
    # adds one protective copy; with donate_argnums it is completely free).
    y = identity_forward(x)
    jax.block_until_ready(y)
    assert y.shape == x.shape and y.dtype == x.dtype
    assert bool(jnp.all(y == x))

    # Copy path, small array -> collapses to a single whole-array DMA.
    y1 = identity_forward_copy(x)
    jax.block_until_ready(y1)
    assert y1.shape == x.shape and y1.dtype == x.dtype
    assert bool(jnp.all(y1 == x))

    # Copy path with the multi-chunk DMA code exercised explicitly
    # (min_chunk_bytes=1 forces K=2 chunks over the leading dim of 2).
    y2 = identity_forward_copy(x, min_chunk_bytes=1)
    jax.block_until_ready(y2)
    assert y2.shape == x.shape and y2.dtype == x.dtype
    assert bool(jnp.all(y2 == x))

    # Pure Python pass-through (preferred inside larger jitted models).
    assert identity(x) is x

    print("KERNEL_OK")
</pallas_src>

<mosaic_0001>
module attributes {stable_mosaic.version = 11 : i64} {
  func.func @_identity_alias_kernel(%arg0: memref<2x4x16x16xf32, #tpu.memory_space<any>>, %arg1: memref<2x4x16x16xf32, #tpu.memory_space<any>>) attributes {dimension_semantics = [], scalar_prefetch = 0 : i64, scratch_operands = 0 : i64, tpu.core_type = #tpu.core_type<tc>} {
    return
  }
}

</mosaic_0001>

<bundles_post_ra>
// kernel: tpu_custom_call.1
= control target key start
LH: loop header
LB: loop body
LE: loop exit
PB: predicated region body
PF: predicated region fallthrough
CT: control target
= control target key end

     0   :  { %s16_s0 = inlined_call_operand.hbm [shape: f32[2,4,16,16], index: 0, kind: input, shape index: {}, may-alias: {0,1}]   ;;  %s17_s1 = inlined_call_operand.hbm [shape: f32[2,4,16,16], index: 1, kind: output, shape index: {}, may-alias: {0,1}]  }

</bundles_post_ra>
